<compile_context>
chip_gen: v7x
topology: tpu7x:2x2x1
jax: 0.10.0
libtpu: 0.0.40
codegen_flags: <defaults>
</compile_context>

<pallas_src>
import jax
import jax.numpy as jnp
import numpy as np
from jax.experimental import pallas as pl
from jax.experimental.pallas import tpu as pltpu

EPS = 1e-5


def transition_kernel(x_ref, scale_ref, bias_ref, pool_ref, w_ref, o_ref):
    # x_ref:     (1, Cin, BHp, 2*W)  rows pre-paired: [..., hp, s*W + w] == x[..., 2*hp + s, w]
    # scale_ref: (1, Cin, 1, 1)      gamma / sqrt(var + eps)
    # bias_ref:  (1, Cin, 1, 1)      beta - mean * scale
    # pool_ref:  (W, W//2)           0.25 at [2j, j] and [2j+1, j]  (W-pool + averaging)
    # w_ref:     (Cout, Cin)         1x1 conv weight, lives in SMEM (scalar reads)
    # o_ref:     (1, Cout, BHp, W//2)
    x = x_ref[...].astype(jnp.float32)

    # BatchNorm (inference affine form) + ReLU -- elementwise on the VPU.
    y = jnp.maximum(x * scale_ref[...] + bias_ref[...], 0.0)

    _, cin, bhp, two_w = y.shape
    w_full = two_w // 2

    # H-pool: the even / odd source rows are the two contiguous lane halves.
    yv = y[..., :w_full] + y[..., w_full:]                      # (1, Cin, BHp, W)

    # Collapse leading dims (lane dim untouched), then do the W-pool and the
    # 1/4 averaging with one tiny constant matmul; it also compacts the lane
    # axis from W to W/2 without any lane shuffles.
    yv2 = yv.reshape(cin * bhp, w_full)                         # (Cin*BHp, W)
    p2 = jnp.dot(yv2, pool_ref[...],
                 preferred_element_type=jnp.float32)            # (Cin*BHp, Wp)

    # 1x1 conv as VPU broadcast-multiply-adds over channels (channels are far
    # too small for the MXU at these sizes).
    cout = o_ref.shape[1]
    for c in range(cout):
        acc = w_ref[c, 0] * p2[0:bhp, :]
        for k in range(1, cin):
            acc = acc + w_ref[c, k] * p2[k * bhp:(k + 1) * bhp, :]
        o_ref[0, c] = acc.astype(o_ref.dtype)


def transition_forward(x_nchw, gamma, beta, running_mean, running_var, w_oihw,
                       *, block_hp=None):
    """x_nchw: (N, Cin, H, W); w_oihw: (Cout, Cin, 1, 1) -> (N, Cout, H//2, W//2)."""
    N, Cin, H, W = x_nchw.shape
    Cout = w_oihw.shape[0]
    assert H % 2 == 0 and W % 2 == 0, "2x2 stride-2 avg-pool requires even H and W"
    Hp, Wp = H // 2, W // 2

    # FREE reshape (no data movement): pair the two rows of every pooling
    # window along the fast axis.
    x_r = x_nchw.reshape(N, Cin, Hp, 2 * W)

    # Fold BN (eval mode) into a per-channel scale / bias.
    scale = gamma * jax.lax.rsqrt(running_var + EPS)
    bias = beta - running_mean * scale
    scale4 = scale.reshape(1, Cin, 1, 1).astype(jnp.float32)
    bias4 = bias.reshape(1, Cin, 1, 1).astype(jnp.float32)

    # Constant W-pooling matrix (carries the 1/4 averaging factor as well).
    pool_mat = 0.25 * (jnp.arange(W)[:, None] // 2
                       == jnp.arange(Wp)[None, :]).astype(jnp.float32)

    # 1x1 conv weight as a small (Cout, Cin) scalar table for SMEM.
    w2 = w_oihw.reshape(Cout, Cin).astype(jnp.float32)

    # H-tiling: bounds per-step VMEM at real DenseNet shapes (v7x has the
    # smallest VMEM) and gives the pipeline >1 step per image when possible.
    if block_hp is None:
        block_hp = 8 if (Hp > 8 and Hp % 8 == 0) else Hp
    assert Hp % block_hp == 0
    n_hb = Hp // block_hp

    out = pl.pallas_call(
        transition_kernel,
        out_shape=jax.ShapeDtypeStruct((N, Cout, Hp, Wp), x_nchw.dtype),
        grid_spec=pltpu.PrefetchScalarGridSpec(
            num_scalar_prefetch=0,
            grid=(N, n_hb),
            in_specs=[
                pl.BlockSpec((1, Cin, block_hp, 2 * W), lambda n, h: (n, 0, h, 0)),
                pl.BlockSpec((1, Cin, 1, 1), lambda n, h: (0, 0, 0, 0)),
                pl.BlockSpec((1, Cin, 1, 1), lambda n, h: (0, 0, 0, 0)),
                pl.BlockSpec((W, Wp), lambda n, h: (0, 0)),
                pl.BlockSpec(memory_space=pltpu.MemorySpace.SMEM),
            ],
            out_specs=pl.BlockSpec((1, Cout, block_hp, Wp),
                                   lambda n, h: (n, 0, h, 0)),
        ),
        compiler_params=pltpu.CompilerParams(
            dimension_semantics=("parallel", "parallel"),
            vmem_limit_bytes=32 * 1024 * 1024,
        ),
    )(x_r, scale4, bias4, pool_mat, w2)

    # Output is already NCHW-shaped: (N, Cout, Hp, Wp).  No wrapper transpose.
    return out


def reference_forward(x_nchw, gamma, beta, mean, var, w_oihw):
    """Plain-JAX reference matching the PyTorch module (eval mode)."""
    xh = (x_nchw - mean[None, :, None, None]) * jax.lax.rsqrt(var + EPS)[None, :, None, None]
    xh = gamma[None, :, None, None] * xh + beta[None, :, None, None]
    xh = jnp.maximum(xh, 0.0)
    y = jax.lax.conv_general_dilated(
        xh, w_oihw, window_strides=(1, 1), padding="VALID",
        dimension_numbers=("NCHW", "OIHW", "NCHW"))
    N, C, H, W = y.shape
    return y.reshape(N, C, H // 2, 2, W // 2, 2).mean(axis=(3, 5))


if __name__ == "__main__":
    # Small shapes consistent with the module: batch=2, in_planes=8,
    # out_planes=4, spatial=16x16.
    N, Cin, Cout, H, W = 2, 8, 4, 16, 16

    key = jax.random.PRNGKey(0)
    kx, kg, kb, km, kv, kw = jax.random.split(key, 6)

    x = jax.random.normal(kx, (N, Cin, H, W), dtype=jnp.float32)

    # Deterministic synthetic BatchNorm + conv parameters.
    gamma = 1.0 + 0.1 * jax.random.normal(kg, (Cin,), dtype=jnp.float32)
    beta = 0.1 * jax.random.normal(kb, (Cin,), dtype=jnp.float32)
    running_mean = 0.1 * jax.random.normal(km, (Cin,), dtype=jnp.float32)
    running_var = 1.0 + 0.1 * jax.random.uniform(kv, (Cin,), dtype=jnp.float32)
    # Kaiming-ish 1x1 conv weight, no bias.
    w = jax.random.normal(kw, (Cout, Cin, 1, 1), dtype=jnp.float32) * (2.0 / Cin) ** 0.5

    out = transition_forward(x, gamma, beta, running_mean, running_var, w)
    out = jax.block_until_ready(out)

    ref = reference_forward(x, gamma, beta, running_mean, running_var, w)
    ref = jax.block_until_ready(ref)

    assert out.shape == (N, Cout, H // 2, W // 2), out.shape
    np.testing.assert_allclose(np.asarray(out), np.asarray(ref), rtol=1e-5, atol=1e-5)

    # TODO(synk): get_sequential_output / training-mode BN running-stat updates
    # are host/framework-level bookkeeping, not part of the hot-path kernel.
    print("KERNEL_OK")
</pallas_src>

<mosaic_0001>
module attributes {stable_mosaic.version = 11 : i64} {
  func.func @transition_kernel(%arg0: i32, %arg1: i32, %arg2: memref<1x8x8x32xf32, #tpu.memory_space<vmem>>, %arg3: memref<1x8x1x1xf32, #tpu.memory_space<vmem>>, %arg4: memref<1x8x1x1xf32, #tpu.memory_space<vmem>>, %arg5: memref<16x8xf32, #tpu.memory_space<vmem>>, %arg6: memref<4x8xf32, #tpu.memory_space<smem>>, %arg7: memref<1x4x8x8xf32, #tpu.memory_space<vmem>>) attributes {dimension_semantics = [#tpu.dimension_semantics<parallel>, #tpu.dimension_semantics<parallel>], iteration_bounds = array<i64: 2, 1>, scalar_prefetch = 0 : i64, scratch_operands = 0 : i64, tpu.core_type = #tpu.core_type<tc>, window_params = [{transform_indices = @transform_0, window_bounds = array<i64: 1, 8, 8, 32>}, {pipeline_mode = #tpu.pipeline_mode<synchronous>, transform_indices = @transform_1, window_bounds = array<i64: 1, 8, 1, 1>}, {pipeline_mode = #tpu.pipeline_mode<synchronous>, transform_indices = @transform_2, window_bounds = array<i64: 1, 8, 1, 1>}, {pipeline_mode = #tpu.pipeline_mode<synchronous>, transform_indices = @transform_3, window_bounds = array<i64: 16, 8>}, {transform_indices = @transform_4, window_bounds = array<i64: 4, 8>}, {transform_indices = @transform_5, window_bounds = array<i64: 1, 4, 8, 8>}]} {
    %c0 = arith.constant 0 : index
    %c0_0 = arith.constant 0 : index
    %c0_1 = arith.constant 0 : index
    %c0_2 = arith.constant 0 : index
    %0 = vector.load %arg2[%c0, %c0_0, %c0_1, %c0_2] : memref<1x8x8x32xf32, #tpu.memory_space<vmem>>, vector<1x8x8x32xf32>
    %c0_3 = arith.constant 0 : index
    %c0_4 = arith.constant 0 : index
    %c0_5 = arith.constant 0 : index
    %c0_6 = arith.constant 0 : index
    %1 = vector.load %arg3[%c0_3, %c0_4, %c0_5, %c0_6] : memref<1x8x1x1xf32, #tpu.memory_space<vmem>>, vector<1x8x1x1xf32>
    %2 = vector.broadcast %1 : vector<1x8x1x1xf32> to vector<1x8x8x32xf32>
    %3 = arith.mulf %0, %2 : vector<1x8x8x32xf32>
    %c0_7 = arith.constant 0 : index
    %c0_8 = arith.constant 0 : index
    %c0_9 = arith.constant 0 : index
    %c0_10 = arith.constant 0 : index
    %4 = vector.load %arg4[%c0_7, %c0_8, %c0_9, %c0_10] : memref<1x8x1x1xf32, #tpu.memory_space<vmem>>, vector<1x8x1x1xf32>
    %5 = vector.broadcast %4 : vector<1x8x1x1xf32> to vector<1x8x8x32xf32>
    %6 = arith.addf %3, %5 : vector<1x8x8x32xf32>
    %cst = arith.constant 0.000000e+00 : f32
    %7 = vector.broadcast %cst : f32 to vector<1x8x8x32xf32>
    %8 = arith.maximumf %6, %7 : vector<1x8x8x32xf32>
    %9 = vector.extract_strided_slice %8 {offsets = [0, 0, 0, 0], sizes = [1, 8, 8, 16], strides = [1, 1, 1, 1]} : vector<1x8x8x32xf32> to vector<1x8x8x16xf32>
    %10 = vector.extract_strided_slice %8 {offsets = [0, 0, 0, 16], sizes = [1, 8, 8, 16], strides = [1, 1, 1, 1]} : vector<1x8x8x32xf32> to vector<1x8x8x16xf32>
    %11 = arith.addf %9, %10 : vector<1x8x8x16xf32>
    %12 = vector.shape_cast %11 : vector<1x8x8x16xf32> to vector<64x16xf32>
    %c0_11 = arith.constant 0 : index
    %c0_12 = arith.constant 0 : index
    %13 = vector.load %arg5[%c0_11, %c0_12] : memref<16x8xf32, #tpu.memory_space<vmem>>, vector<16x8xf32>
    %cst_13 = arith.constant dense<0.000000e+00> : vector<64x8xf32>
    %14 = tpu.matmul %12, %13, %cst_13 {dimension_numbers = #tpu.dot_dimension_numbers<[1], [0], [0], [1], [0, 0, 1, 1], [], []>} : vector<64x16xf32>, vector<16x8xf32>, vector<64x8xf32> -> vector<64x8xf32>
    %c0_14 = arith.constant 0 : index
    %c0_15 = arith.constant 0 : index
    %15 = memref.load %arg6[%c0_14, %c0_15] : memref<4x8xf32, #tpu.memory_space<smem>>
    %16 = vector.extract_strided_slice %14 {offsets = [0, 0], sizes = [8, 8], strides = [1, 1]} : vector<64x8xf32> to vector<8x8xf32>
    %17 = vector.broadcast %15 : f32 to vector<8x8xf32>
    %18 = arith.mulf %17, %16 : vector<8x8xf32>
    %c0_16 = arith.constant 0 : index
    %c1 = arith.constant 1 : index
    %19 = memref.load %arg6[%c0_16, %c1] : memref<4x8xf32, #tpu.memory_space<smem>>
    %20 = vector.extract_strided_slice %14 {offsets = [8, 0], sizes = [8, 8], strides = [1, 1]} : vector<64x8xf32> to vector<8x8xf32>
    %21 = vector.broadcast %19 : f32 to vector<8x8xf32>
    %22 = arith.mulf %21, %20 : vector<8x8xf32>
    %23 = arith.addf %18, %22 : vector<8x8xf32>
    %c0_17 = arith.constant 0 : index
    %c2 = arith.constant 2 : index
    %24 = memref.load %arg6[%c0_17, %c2] : memref<4x8xf32, #tpu.memory_space<smem>>
    %25 = vector.extract_strided_slice %14 {offsets = [16, 0], sizes = [8, 8], strides = [1, 1]} : vector<64x8xf32> to vector<8x8xf32>
    %26 = vector.broadcast %24 : f32 to vector<8x8xf32>
    %27 = arith.mulf %26, %25 : vector<8x8xf32>
    %28 = arith.addf %23, %27 : vector<8x8xf32>
    %c0_18 = arith.constant 0 : index
    %c3 = arith.constant 3 : index
    %29 = memref.load %arg6[%c0_18, %c3] : memref<4x8xf32, #tpu.memory_space<smem>>
    %30 = vector.extract_strided_slice %14 {offsets = [24, 0], sizes = [8, 8], strides = [1, 1]} : vector<64x8xf32> to vector<8x8xf32>
    %31 = vector.broadcast %29 : f32 to vector<8x8xf32>
    %32 = arith.mulf %31, %30 : vector<8x8xf32>
    %33 = arith.addf %28, %32 : vector<8x8xf32>
    %c0_19 = arith.constant 0 : index
    %c4 = arith.constant 4 : index
    %34 = memref.load %arg6[%c0_19, %c4] : memref<4x8xf32, #tpu.memory_space<smem>>
    %35 = vector.extract_strided_slice %14 {offsets = [32, 0], sizes = [8, 8], strides = [1, 1]} : vector<64x8xf32> to vector<8x8xf32>
    %36 = vector.broadcast %34 : f32 to vector<8x8xf32>
    %37 = arith.mulf %36, %35 : vector<8x8xf32>
    %38 = arith.addf %33, %37 : vector<8x8xf32>
    %c0_20 = arith.constant 0 : index
    %c5 = arith.constant 5 : index
    %39 = memref.load %arg6[%c0_20, %c5] : memref<4x8xf32, #tpu.memory_space<smem>>
    %40 = vector.extract_strided_slice %14 {offsets = [40, 0], sizes = [8, 8], strides = [1, 1]} : vector<64x8xf32> to vector<8x8xf32>
    %41 = vector.broadcast %39 : f32 to vector<8x8xf32>
    %42 = arith.mulf %41, %40 : vector<8x8xf32>
    %43 = arith.addf %38, %42 : vector<8x8xf32>
    %c0_21 = arith.constant 0 : index
    %c6 = arith.constant 6 : index
    %44 = memref.load %arg6[%c0_21, %c6] : memref<4x8xf32, #tpu.memory_space<smem>>
    %45 = vector.extract_strided_slice %14 {offsets = [48, 0], sizes = [8, 8], strides = [1, 1]} : vector<64x8xf32> to vector<8x8xf32>
    %46 = vector.broadcast %44 : f32 to vector<8x8xf32>
    %47 = arith.mulf %46, %45 : vector<8x8xf32>
    %48 = arith.addf %43, %47 : vector<8x8xf32>
    %c0_22 = arith.constant 0 : index
    %c7 = arith.constant 7 : index
    %49 = memref.load %arg6[%c0_22, %c7] : memref<4x8xf32, #tpu.memory_space<smem>>
    %50 = vector.extract_strided_slice %14 {offsets = [56, 0], sizes = [8, 8], strides = [1, 1]} : vector<64x8xf32> to vector<8x8xf32>
    %51 = vector.broadcast %49 : f32 to vector<8x8xf32>
    %52 = arith.mulf %51, %50 : vector<8x8xf32>
    %53 = arith.addf %48, %52 : vector<8x8xf32>
    %c0_23 = arith.constant 0 : index
    %c0_24 = arith.constant 0 : index
    %c0_25 = arith.constant 0 : index
    %c0_26 = arith.constant 0 : index
    %54 = vector.load %arg7[%c0_23, %c0_24, %c0_25, %c0_26] : memref<1x4x8x8xf32, #tpu.memory_space<vmem>>, vector<1x1x8x8xf32>
    %55 = vector.shape_cast %54 : vector<1x1x8x8xf32> to vector<8x8xf32>
    %56 = vector.shape_cast %53 : vector<8x8xf32> to vector<1x1x8x8xf32>
    tpu.vector_store %arg7[%c0_23, %c0_24, %c0_25, %c0_26], %56 {strides = array<i32>} : memref<1x4x8x8xf32, #tpu.memory_space<vmem>>, vector<1x1x8x8xf32>,
    %c1_27 = arith.constant 1 : index
    %c0_28 = arith.constant 0 : index
    %57 = memref.load %arg6[%c1_27, %c0_28] : memref<4x8xf32, #tpu.memory_space<smem>>
    %58 = vector.extract_strided_slice %14 {offsets = [0, 0], sizes = [8, 8], strides = [1, 1]} : vector<64x8xf32> to vector<8x8xf32>
    %59 = vector.broadcast %57 : f32 to vector<8x8xf32>
    %60 = arith.mulf %59, %58 : vector<8x8xf32>
    %c1_29 = arith.constant 1 : index
    %c1_30 = arith.constant 1 : index
    %61 = memref.load %arg6[%c1_29, %c1_30] : memref<4x8xf32, #tpu.memory_space<smem>>
    %62 = vector.extract_strided_slice %14 {offsets = [8, 0], sizes = [8, 8], strides = [1, 1]} : vector<64x8xf32> to vector<8x8xf32>
    %63 = vector.broadcast %61 : f32 to vector<8x8xf32>
    %64 = arith.mulf %63, %62 : vector<8x8xf32>
    %65 = arith.addf %60, %64 : vector<8x8xf32>
    %c1_31 = arith.constant 1 : index
    %c2_32 = arith.constant 2 : index
    %66 = memref.load %arg6[%c1_31, %c2_32] : memref<4x8xf32, #tpu.memory_space<smem>>
    %67 = vector.extract_strided_slice %14 {offsets = [16, 0], sizes = [8, 8], strides = [1, 1]} : vector<64x8xf32> to vector<8x8xf32>
    %68 = vector.broadcast %66 : f32 to vector<8x8xf32>
    %69 = arith.mulf %68, %67 : vector<8x8xf32>
    %70 = arith.addf %65, %69 : vector<8x8xf32>
    %c1_33 = arith.constant 1 : index
    %c3_34 = arith.constant 3 : index
    %71 = memref.load %arg6[%c1_33, %c3_34] : memref<4x8xf32, #tpu.memory_space<smem>>
    %72 = vector.extract_strided_slice %14 {offsets = [24, 0], sizes = [8, 8], strides = [1, 1]} : vector<64x8xf32> to vector<8x8xf32>
    %73 = vector.broadcast %71 : f32 to vector<8x8xf32>
    %74 = arith.mulf %73, %72 : vector<8x8xf32>
    %75 = arith.addf %70, %74 : vector<8x8xf32>
    %c1_35 = arith.constant 1 : index
    %c4_36 = arith.constant 4 : index
    %76 = memref.load %arg6[%c1_35, %c4_36] : memref<4x8xf32, #tpu.memory_space<smem>>
    %77 = vector.extract_strided_slice %14 {offsets = [32, 0], sizes = [8, 8], strides = [1, 1]} : vector<64x8xf32> to vector<8x8xf32>
    %78 = vector.broadcast %76 : f32 to vector<8x8xf32>
    %79 = arith.mulf %78, %77 : vector<8x8xf32>
    %80 = arith.addf %75, %79 : vector<8x8xf32>
    %c1_37 = arith.constant 1 : index
    %c5_38 = arith.constant 5 : index
    %81 = memref.load %arg6[%c1_37, %c5_38] : memref<4x8xf32, #tpu.memory_space<smem>>
    %82 = vector.extract_strided_slice %14 {offsets = [40, 0], sizes = [8, 8], strides = [1, 1]} : vector<64x8xf32> to vector<8x8xf32>
    %83 = vector.broadcast %81 : f32 to vector<8x8xf32>
    %84 = arith.mulf %83, %82 : vector<8x8xf32>
    %85 = arith.addf %80, %84 : vector<8x8xf32>
    %c1_39 = arith.constant 1 : index
    %c6_40 = arith.constant 6 : index
    %86 = memref.load %arg6[%c1_39, %c6_40] : memref<4x8xf32, #tpu.memory_space<smem>>
    %87 = vector.extract_strided_slice %14 {offsets = [48, 0], sizes = [8, 8], strides = [1, 1]} : vector<64x8xf32> to vector<8x8xf32>
    %88 = vector.broadcast %86 : f32 to vector<8x8xf32>
    %89 = arith.mulf %88, %87 : vector<8x8xf32>
    %90 = arith.addf %85, %89 : vector<8x8xf32>
    %c1_41 = arith.constant 1 : index
    %c7_42 = arith.constant 7 : index
    %91 = memref.load %arg6[%c1_41, %c7_42] : memref<4x8xf32, #tpu.memory_space<smem>>
    %92 = vector.extract_strided_slice %14 {offsets = [56, 0], sizes = [8, 8], strides = [1, 1]} : vector<64x8xf32> to vector<8x8xf32>
    %93 = vector.broadcast %91 : f32 to vector<8x8xf32>
    %94 = arith.mulf %93, %92 : vector<8x8xf32>
    %95 = arith.addf %90, %94 : vector<8x8xf32>
    %c0_43 = arith.constant 0 : index
    %c1_44 = arith.constant 1 : index
    %c0_45 = arith.constant 0 : index
    %c0_46 = arith.constant 0 : index
    %96 = vector.load %arg7[%c0_43, %c1_44, %c0_45, %c0_46] : memref<1x4x8x8xf32, #tpu.memory_space<vmem>>, vector<1x1x8x8xf32>
    %97 = vector.shape_cast %96 : vector<1x1x8x8xf32> to vector<8x8xf32>
    %98 = vector.shape_cast %95 : vector<8x8xf32> to vector<1x1x8x8xf32>
    tpu.vector_store %arg7[%c0_43, %c1_44, %c0_45, %c0_46], %98 {strides = array<i32>} : memref<1x4x8x8xf32, #tpu.memory_space<vmem>>, vector<1x1x8x8xf32>,
    %c2_47 = arith.constant 2 : index
    %c0_48 = arith.constant 0 : index
    %99 = memref.load %arg6[%c2_47, %c0_48] : memref<4x8xf32, #tpu.memory_space<smem>>
    %100 = vector.extract_strided_slice %14 {offsets = [0, 0], sizes = [8, 8], strides = [1, 1]} : vector<64x8xf32> to vector<8x8xf32>
    %101 = vector.broadcast %99 : f32 to vector<8x8xf32>
    %102 = arith.mulf %101, %100 : vector<8x8xf32>
    %c2_49 = arith.constant 2 : index
    %c1_50 = arith.constant 1 : index
    %103 = memref.load %arg6[%c2_49, %c1_50] : memref<4x8xf32, #tpu.memory_space<smem>>
    %104 = vector.extract_strided_slice %14 {offsets = [8, 0], sizes = [8, 8], strides = [1, 1]} : vector<64x8xf32> to vector<8x8xf32>
    %105 = vector.broadcast %103 : f32 to vector<8x8xf32>
    %106 = arith.mulf %105, %104 : vector<8x8xf32>
    %107 = arith.addf %102, %106 : vector<8x8xf32>
    %c2_51 = arith.constant 2 : index
    %c2_52 = arith.constant 2 : index
    %108 = memref.load %arg6[%c2_51, %c2_52] : memref<4x8xf32, #tpu.memory_space<smem>>
    %109 = vector.extract_strided_slice %14 {offsets = [16, 0], sizes = [8, 8], strides = [1, 1]} : vector<64x8xf32> to vector<8x8xf32>
    %110 = vector.broadcast %108 : f32 to vector<8x8xf32>
    %111 = arith.mulf %110, %109 : vector<8x8xf32>
    %112 = arith.addf %107, %111 : vector<8x8xf32>
    %c2_53 = arith.constant 2 : index
    %c3_54 = arith.constant 3 : index
    %113 = memref.load %arg6[%c2_53, %c3_54] : memref<4x8xf32, #tpu.memory_space<smem>>
    %114 = vector.extract_strided_slice %14 {offsets = [24, 0], sizes = [8, 8], strides = [1, 1]} : vector<64x8xf32> to vector<8x8xf32>
    %115 = vector.broadcast %113 : f32 to vector<8x8xf32>
    %116 = arith.mulf %115, %114 : vector<8x8xf32>
    %117 = arith.addf %112, %116 : vector<8x8xf32>
    %c2_55 = arith.constant 2 : index
    %c4_56 = arith.constant 4 : index
    %118 = memref.load %arg6[%c2_55, %c4_56] : memref<4x8xf32, #tpu.memory_space<smem>>
    %119 = vector.extract_strided_slice %14 {offsets = [32, 0], sizes = [8, 8], strides = [1, 1]} : vector<64x8xf32> to vector<8x8xf32>
    %120 = vector.broadcast %118 : f32 to vector<8x8xf32>
    %121 = arith.mulf %120, %119 : vector<8x8xf32>
    %122 = arith.addf %117, %121 : vector<8x8xf32>
    %c2_57 = arith.constant 2 : index
    %c5_58 = arith.constant 5 : index
    %123 = memref.load %arg6[%c2_57, %c5_58] : memref<4x8xf32, #tpu.memory_space<smem>>
    %124 = vector.extract_strided_slice %14 {offsets = [40, 0], sizes = [8, 8], strides = [1, 1]} : vector<64x8xf32> to vector<8x8xf32>
    %125 = vector.broadcast %123 : f32 to vector<8x8xf32>
    %126 = arith.mulf %125, %124 : vector<8x8xf32>
    %127 = arith.addf %122, %126 : vector<8x8xf32>
    %c2_59 = arith.constant 2 : index
    %c6_60 = arith.constant 6 : index
    %128 = memref.load %arg6[%c2_59, %c6_60] : memref<4x8xf32, #tpu.memory_space<smem>>
    %129 = vector.extract_strided_slice %14 {offsets = [48, 0], sizes = [8, 8], strides = [1, 1]} : vector<64x8xf32> to vector<8x8xf32>
    %130 = vector.broadcast %128 : f32 to vector<8x8xf32>
    %131 = arith.mulf %130, %129 : vector<8x8xf32>
    %132 = arith.addf %127, %131 : vector<8x8xf32>
    %c2_61 = arith.constant 2 : index
    %c7_62 = arith.constant 7 : index
    %133 = memref.load %arg6[%c2_61, %c7_62] : memref<4x8xf32, #tpu.memory_space<smem>>
    %134 = vector.extract_strided_slice %14 {offsets = [56, 0], sizes = [8, 8], strides = [1, 1]} : vector<64x8xf32> to vector<8x8xf32>
    %135 = vector.broadcast %133 : f32 to vector<8x8xf32>
    %136 = arith.mulf %135, %134 : vector<8x8xf32>
    %137 = arith.addf %132, %136 : vector<8x8xf32>
    %c0_63 = arith.constant 0 : index
    %c2_64 = arith.constant 2 : index
    %c0_65 = arith.constant 0 : index
    %c0_66 = arith.constant 0 : index
    %138 = vector.load %arg7[%c0_63, %c2_64, %c0_65, %c0_66] : memref<1x4x8x8xf32, #tpu.memory_space<vmem>>, vector<1x1x8x8xf32>
    %139 = vector.shape_cast %138 : vector<1x1x8x8xf32> to vector<8x8xf32>
    %140 = vector.shape_cast %137 : vector<8x8xf32> to vector<1x1x8x8xf32>
    tpu.vector_store %arg7[%c0_63, %c2_64, %c0_65, %c0_66], %140 {strides = array<i32>} : memref<1x4x8x8xf32, #tpu.memory_space<vmem>>, vector<1x1x8x8xf32>,
    %c3_67 = arith.constant 3 : index
    %c0_68 = arith.constant 0 : index
    %141 = memref.load %arg6[%c3_67, %c0_68] : memref<4x8xf32, #tpu.memory_space<smem>>
    %142 = vector.extract_strided_slice %14 {offsets = [0, 0], sizes = [8, 8], strides = [1, 1]} : vector<64x8xf32> to vector<8x8xf32>
    %143 = vector.broadcast %141 : f32 to vector<8x8xf32>
    %144 = arith.mulf %143, %142 : vector<8x8xf32>
    %c3_69 = arith.constant 3 : index
    %c1_70 = arith.constant 1 : index
    %145 = memref.load %arg6[%c3_69, %c1_70] : memref<4x8xf32, #tpu.memory_space<smem>>
    %146 = vector.extract_strided_slice %14 {offsets = [8, 0], sizes = [8, 8], strides = [1, 1]} : vector<64x8xf32> to vector<8x8xf32>
    %147 = vector.broadcast %145 : f32 to vector<8x8xf32>
    %148 = arith.mulf %147, %146 : vector<8x8xf32>
    %149 = arith.addf %144, %148 : vector<8x8xf32>
    %c3_71 = arith.constant 3 : index
    %c2_72 = arith.constant 2 : index
    %150 = memref.load %arg6[%c3_71, %c2_72] : memref<4x8xf32, #tpu.memory_space<smem>>
    %151 = vector.extract_strided_slice %14 {offsets = [16, 0], sizes = [8, 8], strides = [1, 1]} : vector<64x8xf32> to vector<8x8xf32>
    %152 = vector.broadcast %150 : f32 to vector<8x8xf32>
    %153 = arith.mulf %152, %151 : vector<8x8xf32>
    %154 = arith.addf %149, %153 : vector<8x8xf32>
    %c3_73 = arith.constant 3 : index
    %c3_74 = arith.constant 3 : index
    %155 = memref.load %arg6[%c3_73, %c3_74] : memref<4x8xf32, #tpu.memory_space<smem>>
    %156 = vector.extract_strided_slice %14 {offsets = [24, 0], sizes = [8, 8], strides = [1, 1]} : vector<64x8xf32> to vector<8x8xf32>
    %157 = vector.broadcast %155 : f32 to vector<8x8xf32>
    %158 = arith.mulf %157, %156 : vector<8x8xf32>
    %159 = arith.addf %154, %158 : vector<8x8xf32>
    %c3_75 = arith.constant 3 : index
    %c4_76 = arith.constant 4 : index
    %160 = memref.load %arg6[%c3_75, %c4_76] : memref<4x8xf32, #tpu.memory_space<smem>>
    %161 = vector.extract_strided_slice %14 {offsets = [32, 0], sizes = [8, 8], strides = [1, 1]} : vector<64x8xf32> to vector<8x8xf32>
    %162 = vector.broadcast %160 : f32 to vector<8x8xf32>
    %163 = arith.mulf %162, %161 : vector<8x8xf32>
    %164 = arith.addf %159, %163 : vector<8x8xf32>
    %c3_77 = arith.constant 3 : index
    %c5_78 = arith.constant 5 : index
    %165 = memref.load %arg6[%c3_77, %c5_78] : memref<4x8xf32, #tpu.memory_space<smem>>
    %166 = vector.extract_strided_slice %14 {offsets = [40, 0], sizes = [8, 8], strides = [1, 1]} : vector<64x8xf32> to vector<8x8xf32>
    %167 = vector.broadcast %165 : f32 to vector<8x8xf32>
    %168 = arith.mulf %167, %166 : vector<8x8xf32>
    %169 = arith.addf %164, %168 : vector<8x8xf32>
    %c3_79 = arith.constant 3 : index
    %c6_80 = arith.constant 6 : index
    %170 = memref.load %arg6[%c3_79, %c6_80] : memref<4x8xf32, #tpu.memory_space<smem>>
    %171 = vector.extract_strided_slice %14 {offsets = [48, 0], sizes = [8, 8], strides = [1, 1]} : vector<64x8xf32> to vector<8x8xf32>
    %172 = vector.broadcast %170 : f32 to vector<8x8xf32>
    %173 = arith.mulf %172, %171 : vector<8x8xf32>
    %174 = arith.addf %169, %173 : vector<8x8xf32>
    %c3_81 = arith.constant 3 : index
    %c7_82 = arith.constant 7 : index
    %175 = memref.load %arg6[%c3_81, %c7_82] : memref<4x8xf32, #tpu.memory_space<smem>>
    %176 = vector.extract_strided_slice %14 {offsets = [56, 0], sizes = [8, 8], strides = [1, 1]} : vector<64x8xf32> to vector<8x8xf32>
    %177 = vector.broadcast %175 : f32 to vector<8x8xf32>
    %178 = arith.mulf %177, %176 : vector<8x8xf32>
    %179 = arith.addf %174, %178 : vector<8x8xf32>
    %c0_83 = arith.constant 0 : index
    %c3_84 = arith.constant 3 : index
    %c0_85 = arith.constant 0 : index
    %c0_86 = arith.constant 0 : index
    %180 = vector.load %arg7[%c0_83, %c3_84, %c0_85, %c0_86] : memref<1x4x8x8xf32, #tpu.memory_space<vmem>>, vector<1x1x8x8xf32>
    %181 = vector.shape_cast %180 : vector<1x1x8x8xf32> to vector<8x8xf32>
    %182 = vector.shape_cast %179 : vector<8x8xf32> to vector<1x1x8x8xf32>
    tpu.vector_store %arg7[%c0_83, %c3_84, %c0_85, %c0_86], %182 {strides = array<i32>} : memref<1x4x8x8xf32, #tpu.memory_space<vmem>>, vector<1x1x8x8xf32>,
    return
  }
  func.func @transform_0(%arg0: i32, %arg1: i32) -> (i32, i32, i32, i32) {
    %c0_i32 = arith.constant 0 : i32
    %c0_i32_0 = arith.constant 0 : i32
    %c0_i32_1 = arith.constant 0 : i32
    return %arg0, %c0_i32, %arg1, %c0_i32_0 : i32, i32, i32, i32
  }
  func.func @transform_1(%arg0: i32, %arg1: i32) -> (i32, i32, i32, i32) {
    %c0_i32 = arith.constant 0 : i32
    %c0_i32_0 = arith.constant 0 : i32
    %c0_i32_1 = arith.constant 0 : i32
    %c0_i32_2 = arith.constant 0 : i32
    %c0_i32_3 = arith.constant 0 : i32
    return %c0_i32, %c0_i32_0, %c0_i32_1, %c0_i32_2 : i32, i32, i32, i32
  }
  func.func @transform_2(%arg0: i32, %arg1: i32) -> (i32, i32, i32, i32) {
    %c0_i32 = arith.constant 0 : i32
    %c0_i32_0 = arith.constant 0 : i32
    %c0_i32_1 = arith.constant 0 : i32
    %c0_i32_2 = arith.constant 0 : i32
    %c0_i32_3 = arith.constant 0 : i32
    return %c0_i32, %c0_i32_0, %c0_i32_1, %c0_i32_2 : i32, i32, i32, i32
  }
  func.func @transform_3(%arg0: i32, %arg1: i32) -> (i32, i32) {
    %c0_i32 = arith.constant 0 : i32
    %c0_i32_0 = arith.constant 0 : i32
    %c0_i32_1 = arith.constant 0 : i32
    return %c0_i32, %c0_i32_0 : i32, i32
  }
  func.func @transform_4(%arg0: i32, %arg1: i32) -> (i32, i32) {
    %c0_i32 = arith.constant 0 : i32
    %c0_i32_0 = arith.constant 0 : i32
    %c0_i32_1 = arith.constant 0 : i32
    return %c0_i32, %c0_i32_0 : i32, i32
  }
  func.func @transform_5(%arg0: i32, %arg1: i32) -> (i32, i32, i32, i32) {
    %c0_i32 = arith.constant 0 : i32
    %c0_i32_0 = arith.constant 0 : i32
    %c0_i32_1 = arith.constant 0 : i32
    return %arg0, %c0_i32, %arg1, %c0_i32_0 : i32, i32, i32, i32
  }
}

</mosaic_0001>

<bundles_post_ra>
// kernel: tpu_custom_call.1
= control target key start
LH: loop header
LB: loop body
LE: loop exit
PB: predicated region body
PF: predicated region fallthrough
CT: control target
= control target key end

     0   :  { %s1609_s0 = inlined_call_operand.hbm [shape: f32[2,8,8,32], index: 0, kind: input, shape index: {}]   ;;  %s1610_s1 = inlined_call_operand.vmem [shape: f32[1,8,1,1], index: 1, kind: input, shape index: {}]   ;;  %s1611_s2 = inlined_call_operand.vmem [shape: f32[1,8,1,1], index: 2, kind: input, shape index: {}]   ;;  %s1612_s3 = inlined_call_operand.vmem [shape: f32[16,8], index: 3, kind: input, shape index: {}]   ;;  %s1613_s4 = inlined_call_operand.vmem [shape: f32[4,8], index: 4, kind: input, shape index: {}]   ;;  %s1614_s5 = inlined_call_operand.hbm [shape: f32[2,4,8,8], index: 5, kind: output, shape index: {}]  }
   0x1   :  { %1619 = sst [smem:[#allocation11_spill]] %s1609_s0 }
   0x2   :  { %1620 = sst [smem:[#allocation12_spill]] %s1610_s1 }
   0x3   :  { %10 = vsyncpa [#allocation3], 0 }
   0x4   :  { %12 = vsyncpa [#allocation3 + $0x1], 0 }
   0x5   :  { %13 = vsyncpa [#allocation5], 0 }
   0x6   :  { %14 = vsyncpa [#allocation4], 0 }
   0x7   :  { %16 = vsyncpa [#allocation4 + $0x1], 0  ;;  %s1244_s18 = smov 0   ;;  %s1246_s19 = smov 0  }
   0x8   :  { %s1248_s20 = smov 0   ;;  %s1250_s21 = smov 0  }
   0x9   :  { %s1252_s22 = smov 0   ;;  %s1254_s23 = smov 0  }
   0xa LB: > { %s882_s24 = sadd.s32 4294967295, %s1203_s23   ;;  %s883_s25 = sadd.s32 4294967294, %s1203_s23   ;;  %s1203_s23 = sphi %s1254_s23, %s22_s23   ;;  %s1199_s22 = sphi %s1252_s22, %s1642_s22   ;;  %s1195_s21 = sphi %s1250_s21, %s1641_s21   ;;  %s1191_s20 = sphi %s1248_s20, %s1640_s20   ;;  %s1187_s19 = sphi %s1246_s19, %s1639_s19   ;;  %s1183_s18 = sphi %s1244_s18, %s1638_s18  }
   0xb   : > { %p50_p0 = scmp.ne.s32.totalorder %s1191_s20, %s1187_s19  ;;  %p51_p1 = scmp.eq.s32.totalorder %s1203_s23, 0 }
   0xc   : > { %p56_p2 = scmp.ne.s32.totalorder %s1187_s19, %s1183_s18  ;;  %p1282_p3 = scmp.eq.s32.totalorder %s882_s24, 0 }
   0xd   : > { %p166_p4 = scmp.eq.s32.totalorder %s882_s24, 1  ;;  %p1286_p5 = por %p51_p1, %p50_p0 }
   0xe   : > { %s1621_s27 = scalar_select %p1282_p3, 1, 0 }
   0xf   : > { %p172_p6 = scmp.eq.s32.totalorder %s883_s25, 1  ;;  %p1292_p7 = por %p1282_p3, %p56_p2 }
  0x10   : > { %p1296_p8 = por %p166_p4, %p50_p0  ;;  %p884_p10 = scmp.ge.s32.totalorder %s1203_s23, 1 }
  0x11   : > { %s1623_s29 = scalar_select %p1292_p7, 1, 0 }
  0x12   : > { %s1624_s30 = scalar_select %p1296_p8, 1, 0 }
  0x13   : > { %p1300_p9 = por %p172_p6, %p56_p2  ;;  %p179_p11 = scmp.lt.s32.totalorder %s1203_s23, 3 }
  0x14   : > { %s201_s9 = sshll.u32 %s1613_s4, 4  ;;  %p1012_p0 = scmp.lt.s32.totalorder %s1203_s23, 2  ;;  %s202_s9 = int_to_ptr.vmem [resolvable:$true] %s201_s9 }
  0x15   : > { %s1625_s6 = scalar_select %p1300_p9, 1, 0 }
  0x16   : > { %p1309_p12 = pnand %p884_p10, %p179_p11  ;;  %p1319_p2 = pnand %p1012_p0, %p1286_p5 }
  0x17   : > { %s34_s13 = sadd.s32 1, %s1199_s22  ;;  %s212_s15 = sand.u32 1, %s1191_s20  }
  0x18   : > { %p999_p1 = pneg %p1309_p12  ;;  %p1330_p6 = scmp.ge.s32.totalorder %s34_s13, 2 }
  0x19   : > { %s1072_s16 = scalar_lea.vmem %s202_s9, 64  ;;  %p1080_p13 = scmp.lt.s32.totalorder %s202_s9, %s202_s9 }
  0x1a   : > { %p1325_p4 = pnand %p999_p1, %p1282_p3  ;;  %p1073_p10 = scmp.ne.s32.totalorder %s202_s9, %s1072_s16 }
  0x1b   : > { %p1081_p9 = scmp.lt.s32.totalorder %s1072_s16, %s1072_s16 }
  0x1c   : > { %p1074_p11 = pneg %p1325_p4 }
  0x1d   : > { %p1082_p8 = por %p1081_p9, %p1080_p13 }
  0x1e   : > { %p1075_p5 = pnand %p1074_p11, %p1073_p10 }
  0x20   : > { %p1076_p0 = pneg %p1075_p5 }
  0x22   : > { %p1083_p1 = pnand %p1082_p8, %p1076_p0 }
  0x24   : > { %1086 = shalt.err (!%p1083_p1)
}
  0x25   : > { %s1205_s17 = smov [#allocation6]   ;;  %s1644_s13 = smov (%p1330_p6, %s34_s13), 0 }
  0x26   : > { %1002 = dma.vmem_to_smem (!%p1325_p4), %s202_s9, 64, %s1205_s17, [#allocation5]  }
  0x27   : > { %s887_s24 = sshll.u32 %s212_s15, 6  ;;  %s38_s25 = ssub.s32 %s1199_s22, %s1644_s13 }
  0x28   : > { %p41_p9 = scmp.eq.s32.totalorder %s38_s25, 0  ;;  %s957_s28 = sshll.u32 %s1199_s22, 10 }
  0x29   : > { %s1630_s0 = sld [smem:[#allocation11_spill]]  ;;  %s216_s16 = scalar_lea.vmem [#allocation2], %s887_s24 }
  0x2a   : > { %s224_s26 = sshll.u32 %s216_s16, 4  ;;  %s1631_s9 = sadd.s32 1, %s1191_s20  ;;  %s1356_s26 = int_to_ptr.vmem [resolvable:$true] %s224_s26 }
  0x2b   : > { %s1354_s14 = scalar_select %p41_p9, %s1191_s20, %s1631_s9  }
  0x2c   : > { %s1358_s17 = scalar_lea.sflag [#allocation3], %s212_s15  ;;  %p1089_p13 = pneg %p1319_p2 }
  0x2f   : > { %s1349_s12 = scalar_lea.hbm %s1630_s0, %s957_s28  ;;  %s1092_s24 = scalar_lea.hbm %s1630_s0, 2048 }
  0x30   : > { %s1087_s25 = scalar_lea.hbm %s1349_s12, 1024  ;;  %p1093_p10 = scmp.lt.u32.totalorder %s1349_s12, %s1630_s0 }
  0x31   : > { %p1088_p8 = scmp.ne.s32.totalorder %s1349_s12, %s1087_s25  ;;  %p1094_p11 = scmp.lt.u32.totalorder %s1092_s24, %s1087_s25 }
  0x32   : > { %p1096_p0 = scmp.lt.u32.totalorder %s1087_s25, %s1349_s12 }
  0x33   : > { %p1090_p4 = pnand %p1089_p13, %p1088_p8  ;;  %p1095_p5 = por %p1094_p11, %p1093_p10 }
  0x35   : > { %p1091_p6 = pneg %p1090_p4  ;;  %p1097_p1 = por %p1096_p0, %p1095_p5 }
  0x37   : > { %p1098_p9 = pnand %p1097_p1, %p1091_p6 }
  0x39   : > { %1101 = shalt.err (!%p1098_p9)
}
  0x3a   : > { %s1102_s15 = scalar_lea.vmem %s1356_s26, 1024  ;;  %s1206_s9 = smov [#allocation2]  }
  0x3b   : > { %p1103_p8 = scmp.ne.s32.totalorder %s1356_s26, %s1102_s15  ;;  %s1107_s28 = sshll.u32 %s1206_s9, 4  ;;  %s1108_s28 = int_to_ptr.vmem [resolvable:$false] %s1107_s28 }
  0x3c   : > { %s1109_s7 = scalar_lea.vmem %s1108_s28, 2048  ;;  %p1110_p7 = scmp.lt.s32.totalorder %s1356_s26, %s1108_s28 }
  0x3d   : > { %p1105_p4 = pnand %p1103_p8, %p1089_p13  ;;  %p1111_p10 = scmp.lt.s32.totalorder %s1109_s7, %s1102_s15 }
  0x3f   : > { %p1106_p3 = pneg %p1105_p4  ;;  %p1112_p11 = por %p1111_p10, %p1110_p7 }
  0x41   : > { %p1113_p5 = pnand %p1112_p11, %p1106_p3 }
  0x43   : > { %1116 = shalt.err (!%p1113_p5)
}
  0x44   : > { %s1207_s25 = smov 128   ;;  %s1208_s24 = smov 8  }
  0x45   : > { %1006 = dma.hbm_to_vmem [thread:$0]  (!%p1319_p2), %s1349_s12, 1024, %s1356_s26, %s1358_s17, %s1207_s25, %s1207_s25, %s1208_s24  }
  0x46   : > { %236 = sbr.rel (%p1309_p12) target bundleno = 603 (0x25b), region = 40  ;;  %s1389_s8 = sand.u32 (!%p1309_p12), 1, %s1187_s19  }
  0x47   : > { %s891_s16 = sshll.u32 (!%p1309_p12), %s1389_s8, 6  ;;  %s239_s15 = scalar_lea.sflag (!%p1309_p12), [#allocation3], %s1389_s8 }
  0x48   : > { %s1393_s9 = scalar_lea.vmem (!%p1309_p12), [#allocation2], %s891_s16  ;;  %p1632_p3 = scmp.ne.s32.totalorder (!%p1309_p12), %s1623_s29, 0 }
  0x4d   : > { %1170 = dma.done.wait (%p1632_p3), %s239_s15, 1024  }
  0x4e   : > { %1172 = vsyncadd (%p1632_p3), %s239_s15, 4294966272  ;;  %p1633_p7 = scmp.ne.s32.totalorder %s1621_s27, 0 }
  0x50   : > { %1174 = dma.done.wait (%p1633_p7), [#allocation5], 64  }
  0x51   : > { %1176 = vsyncadd (%p1633_p7), [#allocation5], 4294967232 }
  0x52   : > { %251 = sfence }
  0x53   : > { %v902_v0 = vld [vmem:[%s1611_s2] ss:$0 sm:$0xff]  ;;  %s1634_s1 = sld [smem:[#allocation12_spill]]  ;;  %v1209_v2 = vmov 0   ;;  %v903_v3 = vld [vmem:[%s1611_s2 + $0x1] ss:$0 sm:$0xff] }
  0x54   : > { %1071 = vset.pattern.permute.xlu1 %v1209_v2  ;;  %1070 = vset.pattern.permute.xlu0 %v1209_v2  ;;  %v905_v7 = vld [vmem:[%s1611_s2 + $0x3] ss:$0 sm:$0xff]  ;;  %v904_v8 = vld [vmem:[%s1611_s2 + $0x2] ss:$0 sm:$0xff]  ;;  %v907_v11 = vld [vmem:[%s1611_s2 + $0x5] ss:$0 sm:$0xff] }
  0x55   : > { %419 = vperm.xlu1 %1071, %v902_v0   ;;  %v906_v12 = vld [vmem:[%s1611_s2 + $0x4] ss:$0 sm:$0xff]  ;;  %v909_v15 = vld [vmem:[%s1611_s2 + $0x7] ss:$0 sm:$0xff]  ;;  %v908_v16 = vld [vmem:[%s1611_s2 + $0x6] ss:$0 sm:$0xff] }
  0x56   : > { %v506_v17 = vld [vmem:[%s1612_s3] sm:$0xff]  ;;  %v507_v18 = vld [vmem:[%s1612_s3 + $0x8] sm:$0xff]  ;;  %s1210_s24 = smov 112   ;;  %v277_v32 = vld [vmem:[%s1393_s9 + $0x18] sm:$0xff]  ;;  %vm508_vm0 = vcmask 130048   ;;  %s926_s16 = sld [smem:[#allocation6 + $0x81]] }
  0x57   : > { %v985_v19 = vpack.c.bf16 %v507_v18, %v506_v17  ;;  %v274_v20 = vld [vmem:[%s1393_s9] sm:$0xff]  ;;  %v275_v24 = vld [vmem:[%s1393_s9 + $0x8] sm:$0xff]  ;;  %v276_v34 = vld [vmem:[%s1393_s9 + $0x10] sm:$0xff]  ;;  %s935_s15 = sld [smem:[#allocation6 + $0x101]]  ;;  %s638_s10 = sld [smem:[#allocation6]]  ;;  %vm669_vm1 = vcmask 64512  }
  0x58   : > { %v279_v45 = vld [vmem:[%s1393_s9 + $0x28] sm:$0xff]  ;;  %v278_v47 = vld [vmem:[%s1393_s9 + $0x20] sm:$0xff]  ;;  %v281_v57 = vld [vmem:[%s1393_s9 + $0x38] sm:$0xff]  ;;  %s944_s26 = sld [smem:[#allocation6 + $0x181]]  ;;  %s925_s11 = sld [smem:[#allocation6 + $0x80]] }
  0x59   : > { %v894_v1 = vld [vmem:[%s1634_s1] ss:$0 sm:$0xff]  ;;  %v895_v4 = vld [vmem:[%s1634_s1 + $0x1] ss:$0 sm:$0xff]  ;;  %423 = vperm.xlu1 %1071, %v903_v3   ;;  %v897_v5 = vld [vmem:[%s1634_s1 + $0x3] ss:$0 sm:$0xff]  ;;  %986 = vmatprep.subr.bf16.mxu0 %v985_v19 }
  0x5a   : > { %331 = vperm.xlu0 %1070, %v894_v1   ;;  %v896_v6 = vld [vmem:[%s1634_s1 + $0x2] ss:$0 sm:$0xff]  ;;  %v899_v9 = vld [vmem:[%s1634_s1 + $0x5] ss:$0 sm:$0xff]  ;;  %v898_v10 = vld [vmem:[%s1634_s1 + $0x4] ss:$0 sm:$0xff]  ;;  %989 = vmatprep.subr.bf16.mxu1 %v985_v19 }
  0x5b   : > { %v901_v13 = vld [vmem:[%s1634_s1 + $0x7] ss:$0 sm:$0xff]  ;;  %v900_v14 = vld [vmem:[%s1634_s1 + $0x6] ss:$0 sm:$0xff]  ;;  %988 = vmatpush3.bf16.msra.mxu0 %v985_v19  ;;  %990 = vmatpush3.bf16.msra.mxu1 %v985_v19  ;;  %v280_v59 = vld [vmem:[%s1393_s9 + $0x30] sm:$0xff]  ;;  %s918_s9 = sld [smem:[#allocation6 + $0x1]] }
  0x5c   : > { %s934_s12 = sld [smem:[#allocation6 + $0x100]]  ;;  %s1481_s17 = sld [smem:[#allocation6 + $0x3]] }
  0x5d   : > { %343 = vperm.xlu1 %1071, %v897_v5   ;;  %s943_s29 = sld [smem:[#allocation6 + $0x180]]  ;;  %s1483_s27 = sld [smem:[#allocation6 + $0x83]] }
  0x5e   : > { %335 = vperm.xlu0 %1070, %v895_v4   ;;  %s1485_s28 = sld [smem:[#allocation6 + $0x2]]  ;;  %s1493_s0 = sld [smem:[#allocation6 + $0x103]] }
  0x5f   : > { %s1487_s7 = sld [smem:[#allocation6 + $0x82]]  ;;  %s1495_s1 = sld [smem:[#allocation6 + $0x183]] }
  0x60   : > { %s1489_s25 = sld [smem:[#allocation6 + $0x102]]  ;;  %p1635_p2 = scmp.ne.s32.totalorder %s1624_s30, 0 }
  0x61   : > { %431 = vperm.xlu1 %1071, %v905_v7  }
  0x62   : > { %339 = vperm.xlu0 %1070, %v896_v6  }
  0x65   : > { %351 = vperm.xlu1 %1071, %v899_v9  }
  0x66   : > { %427 = vperm.xlu0 %1070, %v904_v8  }
  0x69   : > { %439 = vperm.xlu1 %1071, %v907_v11  }
  0x6a   : > { %347 = vperm.xlu0 %1070, %v898_v10  }
  0x6d   : > { %359 = vperm.xlu1 %1071, %v901_v13  }
  0x6e   : > { %435 = vperm.xlu0 %1070, %v906_v12  }
  0x71   : > { %447 = vperm.xlu1 %1071, %v909_v15  }
  0x72   : > { %355 = vperm.xlu0 %1070, %v900_v14  }
  0x76   : > { %443 = vperm.xlu0 %1070, %v908_v16  }
  0xd4   : > { %v420_v21 = vpop.permute.xlu1 %419 }
  0xd8   : > { %v424_v26 = vpop.permute.xlu1 %423 }
  0xd9   : > { %v332_v22 = vpop.permute.xlu0 %331 }
  0xda   : > { %v362_v23 = vmul.f32 %v332_v22, %v274_v20  ;;  %v642_v20 = vstv %s918_s9  ;;  %v708_v22 = vstv %s935_s15  ;;  %s1497_s9 = sld [smem:[#allocation6 + $0x5]]  ;;  %s1501_s15 = sld [smem:[#allocation6 + $0x4]] }
  0xdc   : > { %v450_v25 = vadd.f32 %v420_v21, %v362_v23  ;;  %v344_v31 = vpop.permute.xlu1 %343  ;;  %v675_v21 = vstv %s926_s16  ;;  %v741_v23 = vstv %s944_s26  ;;  %s1499_s16 = sld [smem:[#allocation6 + $0x85]]  ;;  %s1503_s26 = sld [smem:[#allocation6 + $0x84]] }
  0xdd   : > { %v336_v27 = vpop.permute.xlu0 %335  ;;  %v365_v36 = vmul.f32 %v344_v31, %v277_v32 }
  0xde   : > { %v458_v28 = vmax.f32 %v450_v25, 0.0  ;;  %v363_v29 = vmul.f32 %v336_v27, %v275_v24  ;;  %v639_v24 = vstv %s638_s10  ;;  %v672_v25 = vstv %s925_s11  ;;  %s1509_s10 = sld [smem:[#allocation6 + $0x104]] }
  0xdf   : > { %v738_v27 = vstv %s943_s29  ;;  %s1511_s11 = sld [smem:[#allocation6 + $0x184]]  ;;  %s1519_s29 = sld [smem:[#allocation6 + $0x185]] }
  0xe0   : > { %v451_v30 = vadd.f32 %v424_v26, %v363_v29  ;;  %474 = vrot.lane.b32.xlu0 %v458_v28, %s1210_s24  ;;  %v432_v38 = vpop.permute.xlu1 %431  ;;  %v705_v26 = vstv %s934_s12  ;;  %s1517_s12 = sld [smem:[#allocation6 + $0x105]] }
  0xe1   : > { %v340_v33 = vpop.permute.xlu0 %339  ;;  %v453_v40 = vadd.f32 %v432_v38, %v365_v36 }
  0xe2   : > { %v459_v35 = vmax.f32 %v451_v30, 0.0  ;;  %v364_v37 = vmul.f32 %v340_v33, %v276_v34 }
  0xe3   : > { %v461_v42 = vmax.f32 %v453_v40, 0.0 }
  0xe4   : > { %476 = vrot.lane.b32.xlu1 %v459_v35, %s1210_s24  ;;  %v352_v44 = vpop.permute.xlu1 %351 }
  0xe5   : > { %v428_v39 = vpop.permute.xlu0 %427  ;;  %v367_v48 = vmul.f32 %v352_v44, %v279_v45  ;;  %v712_v44 = vstv %s1489_s25  ;;  %s1541_s25 = sld [smem:[#allocation6 + $0x107]] }
  0xe6   : > { %v452_v41 = vadd.f32 %v428_v39, %v364_v37 }
  0xe8   : > { %v460_v43 = vmax.f32 %v452_v41, 0.0  ;;  %480 = vrot.lane.b32.xlu1 %v461_v42, %s1210_s24  ;;  %v440_v50 = vpop.permute.xlu1 %439 }
  0xe9   : > { %v348_v46 = vpop.permute.xlu0 %347  ;;  %v455_v52 = vadd.f32 %v440_v50, %v367_v48  ;;  %v683_v48 = vstv %s1483_s27  ;;  %v749_v50 = vstv %s1495_s1  ;;  %s1523_s1 = sld [smem:[#allocation6 + $0x87]]  ;;  %s1527_s27 = sld [smem:[#allocation6 + $0x86]] }
  0xea   : > { %478 = vrot.lane.b32.xlu0 %v460_v43, %s1210_s24  ;;  %v366_v49 = vmul.f32 %v348_v46, %v278_v47  ;;  %v650_v47 = vstv %s1481_s17  ;;  %s1525_s17 = sld [smem:[#allocation6 + $0x6]] }
  0xeb   : > { %v463_v54 = vmax.f32 %v455_v52, 0.0 }
  0xec   : > { %v360_v56 = vpop.permute.xlu1 %359 }
  0xed   : > { %v436_v51 = vpop.permute.xlu0 %435  ;;  %484 = vrot.lane.b32.xlu1 %v463_v54, %s1210_s24  ;;  %v369_v60 = vmul.f32 %v360_v56, %v281_v57 }
  0xee   : > { %v454_v53 = vadd.f32 %v436_v51, %v366_v49  ;;  %v716_v49 = vstv %s1493_s0  ;;  %s1521_s0 = sld [smem:[#allocation6 + $0x7]] }
  0xf0   : > { %v462_v55 = vmax.f32 %v454_v53, 0.0  ;;  %v448_v62 = vpop.permute.xlu1 %447 }
  0xf1   : > { %v356_v58 = vpop.permute.xlu0 %355  ;;  %v457_v0 = vadd.f32 %v448_v62, %v369_v60 }
  0xf2   : > { %482 = vrot.lane.b32.xlu0 %v462_v55, %s1210_s24  ;;  %v368_v61 = vmul.f32 %v356_v58, %v280_v59 }
  0xf3   : > { %v465_v2 = vmax.f32 %v457_v0, 0.0 }
  0xf5   : > { %v444_v63 = vpop.permute.xlu0 %443  ;;  %488 = vrot.lane.b32.xlu1 %v465_v2, %s1210_s24 }
  0xf6   : > { %v456_v1 = vadd.f32 %v444_v63, %v368_v61 }
  0xf8   : > { %v464_v3 = vmax.f32 %v456_v1, 0.0 }
  0xfa   : > { %486 = vrot.lane.b32.xlu0 %v464_v3, %s1210_s24  ;;  %s1491_s24 = sld [smem:[#allocation6 + $0x182]] }
 0x100   : > { %v745_v45 = vstv %s1491_s24  ;;  %s1543_s24 = sld [smem:[#allocation6 + $0x187]] }
 0x152   : > { %v475_v4 = vpop.permute.xlu0 %474 }
 0x153   : > { %v498_v5 = vadd.f32 %v475_v4, %v458_v28  ;;  %v654_v4 = vstv %s1501_s15 }
 0x155   : > { %973 = vmatprep.mubr.msk.f32.mxu0 %vm508_vm0, %v498_v5  ;;  %v687_v5 = vstv %s1503_s26 }
 0x156   : > { %v477_v6 = vpop.permute.xlu1 %476 }
 0x157   : > { %v499_v7 = vadd.f32 %v477_v6, %v459_v35  ;;  %v720_v6 = vstv %s1509_s10 }
 0x159   : > { %974 = vmatmul.mubr.msk.f32.vlgmr.msra.gmra.mrb[0].mxu0 %vm508_vm0, %v499_v7  ;;  %v753_v7 = vstv %s1511_s11 }
 0x15a   : > { %v481_v8 = vpop.permute.xlu1 %480 }
 0x15b   : > { %v501_v10 = vadd.f32 %v481_v8, %v461_v42  ;;  %v646_v42 = vstv %s1485_s28  ;;  %s1533_s28 = sld [smem:[#allocation6 + $0x106]] }
 0x15c   : > { %v479_v9 = vpop.permute.xlu0 %478 }
 0x15d   : > { %v500_v11 = vadd.f32 %v479_v9, %v460_v43  ;;  %v679_v43 = vstv %s1487_s7  ;;  %s1535_s7 = sld [smem:[#allocation6 + $0x186]]  ;;  %v658_v9 = vstv %s1497_s9  ;;  %s893_s9 = sshll.u32 %s1389_s8, 5 }
 0x15e   : > { %s273_s15 = scalar_lea.vmem [#allocation7], %s893_s9 }
 0x15f   : > { %976 = vmatprep.mubr.msk.f32.mxu0 %vm508_vm0, %v500_v11  ;;  %v485_v12 = vpop.permute.xlu1 %484  ;;  %v724_v11 = vstv %s1517_s12  ;;  %s785_s26 = sshll.u32 %s273_s15, 4  ;;  %s1560_s26 = int_to_ptr.vmem [resolvable:$true] %s785_s26 }
 0x160   : > { %977 = vmatmul.mubr.msk.f32.gmra.mrb[2].mxu0 %vm508_vm0, %v501_v10  ;;  %v503_v14 = vadd.f32 %v485_v12, %v463_v54  ;;  %v691_v10 = vstv %s1499_s16  ;;  %v757_v12 = vstv %s1519_s29  ;;  %s958_s16 = sshll.u32 %s1195_s21, 9  ;;  %s771_s21 = scalar_lea.sflag [#allocation4], %s1389_s8 }
 0x161   : > { %s1558_s12 = scalar_lea.hbm %s1614_s5, %s958_s16  ;;  %s1117_s29 = scalar_lea.vmem %s1560_s26, 512 }
 0x162   : > { %p1118_p12 = scmp.ne.s32.totalorder %s1560_s26, %s1117_s29 }
 0x164   : > { %v483_v13 = vpop.permute.xlu0 %482  ;;  %p1119_p13 = pnand %p1118_p12, %p1635_p2 }
 0x165   : > { %v502_v15 = vadd.f32 %v483_v13, %v462_v55 }
 0x166   : > { %p1120_p6 = pneg %p1119_p13 }
 0x167   : > { %979 = vmatprep.mubr.msk.f32.mxu1 %vm508_vm0, %v502_v15  ;;  %v489_v16 = vpop.permute.xlu1 %488 }
 0x168   : > { %980 = vmatmul.mubr.msk.f32.vlgmr.msra.gmra.mrb[0].mxu1 %vm508_vm0, %v503_v14  ;;  %v505_v18 = vadd.f32 %v489_v16, %v465_v2 }
 0x16c   : > { %v487_v17 = vpop.permute.xlu0 %486 }
 0x16d   : > { %v504_v19 = vadd.f32 %v487_v17, %v464_v3 }
 0x16f   : > { %982 = vmatprep.mubr.msk.f32.mxu1 %vm508_vm0, %v504_v19 }
 0x170   : > { %983 = vmatmul.mubr.msk.f32.gmra.mrb[2].mxu1 %vm508_vm0, %v505_v18 }
 0x22c   : > { %v975_v28 = vpop.f32.mrb[0].mxu0 }
 0x22d   : > { %v643_v29 = vmul.f32 %v975_v28, %v642_v20  ;;  %v676_v30 = vmul.f32 %v975_v28, %v675_v21  ;;  %v709_v31 = vmul.f32 %v975_v28, %v708_v22  ;;  %v742_v32 = vmul.f32 %v975_v28, %v741_v23  ;;  %v599_v33 = vpop.f32.mrb[1].mxu0 }
 0x22e   : > { %v640_v34 = vmul.f32 %v639_v24, %v599_v33  ;;  %v673_v35 = vmul.f32 %v672_v25, %v599_v33  ;;  %v706_v36 = vmul.f32 %v705_v26, %v599_v33  ;;  %v739_v37 = vmul.f32 %v738_v27, %v599_v33 }
 0x22f   : > { %v761_v33 = vstv %s1535_s7 }
 0x230   : > { %v644_v38 = vadd.f32 %v643_v29, %v640_v34  ;;  %v677_v39 = vadd.f32 %v676_v30, %v673_v35  ;;  %v710_v40 = vadd.f32 %v709_v31, %v706_v36  ;;  %v743_v41 = vadd.f32 %v742_v32, %v739_v37 }
 0x231   : > { %v662_v30 = vstv %s1525_s17  ;;  %v695_v31 = vstv %s1527_s27  ;;  %v728_v32 = vstv %s1533_s28  ;;  %v666_v35 = vstv %s1521_s0  ;;  %s1211_s0 = smov [#allocation7]  }
 0x232   : > { %v699_v36 = vstv %s1523_s1  ;;  %v732_v37 = vstv %s1541_s25  ;;  %s1121_s1 = sshll.u32 %s1211_s0, 4  ;;  %s1122_s1 = int_to_ptr.vmem [resolvable:$false] %s1121_s1 }
 0x233   : > { %v978_v46 = vpop.f32.mrb[2].mxu0  ;;  %s1123_s17 = scalar_lea.vmem %s1122_s1, 1024  ;;  %p1124_p0 = scmp.lt.s32.totalorder %s1560_s26, %s1122_s1 }
 0x234   : > { %v609_v51 = vpop.f32.mrb[3].mxu0  ;;  %v651_v56 = vmul.f32 %v978_v46, %v650_v47  ;;  %v684_v57 = vmul.f32 %v978_v46, %v683_v48  ;;  %v717_v58 = vmul.f32 %v978_v46, %v716_v49  ;;  %v750_v59 = vmul.f32 %v978_v46, %v749_v50  ;;  %p1125_p1 = scmp.lt.s32.totalorder %s1123_s17, %s1117_s29 }
 0x235   : > { %v647_v52 = vmul.f32 %v646_v42, %v609_v51  ;;  %v680_v53 = vmul.f32 %v679_v43, %v609_v51  ;;  %v713_v54 = vmul.f32 %v712_v44, %v609_v51  ;;  %v746_v55 = vmul.f32 %v745_v45, %v609_v51 }
 0x236   : > { %p1126_p9 = por %p1125_p1, %p1124_p0 }
 0x237   : > { %v648_v60 = vadd.f32 %v647_v52, %v644_v38  ;;  %v681_v61 = vadd.f32 %v680_v53, %v677_v39  ;;  %v714_v62 = vadd.f32 %v713_v54, %v710_v40  ;;  %v747_v63 = vadd.f32 %v746_v55, %v743_v41 }
 0x238   : > { %v765_v38 = vstv %s1543_s24  ;;  %p1127_p8 = pnand %p1126_p9, %p1120_p6 }
 0x239   : > { %v652_v0 = vadd.f32 %v651_v56, %v648_v60  ;;  %v685_v1 = vadd.f32 %v684_v57, %v681_v61  ;;  %v718_v2 = vadd.f32 %v717_v58, %v714_v62  ;;  %v751_v3 = vadd.f32 %v750_v59, %v747_v63 }
 0x23b   : > { %v981_v8 = vpop.f32.mrb[0].mxu1 }
 0x23c   : > { %v619_v13 = vpop.f32.mrb[1].mxu1  ;;  %v659_v18 = vmul.f32 %v981_v8, %v658_v9  ;;  %v692_v19 = vmul.f32 %v981_v8, %v691_v10  ;;  %v725_v20 = vmul.f32 %v981_v8, %v724_v11  ;;  %v758_v21 = vmul.f32 %v981_v8, %v757_v12 }
 0x23d   : > { %v655_v14 = vmul.f32 %v654_v4, %v619_v13  ;;  %v688_v15 = vmul.f32 %v687_v5, %v619_v13  ;;  %v721_v16 = vmul.f32 %v720_v6, %v619_v13  ;;  %v754_v17 = vmul.f32 %v753_v7, %v619_v13 }
 0x23f   : > { %v656_v22 = vadd.f32 %v655_v14, %v652_v0  ;;  %v689_v23 = vadd.f32 %v688_v15, %v685_v1  ;;  %v722_v24 = vadd.f32 %v721_v16, %v718_v2  ;;  %v755_v25 = vadd.f32 %v754_v17, %v751_v3 }
 0x241   : > { %v660_v26 = vadd.f32 %v659_v18, %v656_v22  ;;  %v693_v27 = vadd.f32 %v692_v19, %v689_v23  ;;  %v726_v28 = vadd.f32 %v725_v20, %v722_v24  ;;  %v759_v29 = vadd.f32 %v758_v21, %v755_v25 }
 0x243   : > { %v984_v34 = vpop.f32.mrb[2].mxu1 }
 0x244   : > { %v629_v39 = vpop.f32.mrb[3].mxu1  ;;  %v667_v44 = vmul.f32 %v984_v34, %v666_v35  ;;  %v700_v45 = vmul.f32 %v984_v34, %v699_v36  ;;  %v733_v46 = vmul.f32 %v984_v34, %v732_v37  ;;  %v766_v47 = vmul.f32 %v984_v34, %v765_v38 }
 0x245   : > { %v663_v40 = vmul.f32 %v662_v30, %v629_v39  ;;  %v696_v41 = vmul.f32 %v695_v31, %v629_v39  ;;  %v729_v42 = vmul.f32 %v728_v32, %v629_v39  ;;  %v762_v43 = vmul.f32 %v761_v33, %v629_v39 }
 0x247   : > { %v664_v48 = vadd.f32 %v663_v40, %v660_v26  ;;  %v697_v49 = vadd.f32 %v696_v41, %v693_v27  ;;  %v730_v50 = vadd.f32 %v729_v42, %v726_v28  ;;  %v763_v51 = vadd.f32 %v762_v43, %v759_v29 }
 0x249   : > { %v668_v52 = vadd.f32 %v667_v44, %v664_v48  ;;  %v701_v53 = vadd.f32 %v700_v45, %v697_v49  ;;  %v734_v54 = vadd.f32 %v733_v46, %v730_v50  ;;  %v767_v55 = vadd.f32 %v766_v47, %v763_v51 }
 0x24b   : > { %670 = vst.msk [vmem:[%s273_s15] sm:$0xff] %vm669_vm1, %v668_v52  ;;  %933 = vst.msk [vmem:[%s273_s15 + $0x8] sm:$0xff] %vm669_vm1, %v701_v53 }
 0x24c   : > { %942 = vst.msk [vmem:[%s273_s15 + $0x10] sm:$0xff] %vm669_vm1, %v734_v54  ;;  %951 = vst.msk [vmem:[%s273_s15 + $0x18] sm:$0xff] %vm669_vm1, %v767_v55 }
 0x24d   : > { %1130 = shalt.err (!%p1127_p8)
}
 0x24e   : > { %s1131_s27 = scalar_lea.hbm %s1558_s12, 512  ;;  %s1135_s25 = scalar_lea.hbm %s1614_s5, 1024 }
 0x24f   : > { %p1132_p4 = scmp.ne.s32.totalorder %s1558_s12, %s1131_s27  ;;  %p1136_p5 = scmp.lt.u32.totalorder %s1558_s12, %s1614_s5 }
 0x250   : > { %p1137_p3 = scmp.lt.u32.totalorder %s1135_s25, %s1131_s27  ;;  %p1139_p12 = scmp.lt.u32.totalorder %s1131_s27, %s1558_s12 }
 0x251   : > { %p1133_p10 = pnand %p1132_p4, %p1635_p2 }
 0x252   : > { %p1138_p7 = por %p1137_p3, %p1136_p5 }
 0x253   : > { %p1134_p11 = pneg %p1133_p10 }
 0x254   : > { %p1140_p13 = por %p1139_p12, %p1138_p7 }
 0x256   : > { %p1141_p6 = pnand %p1140_p13, %p1134_p11 }
 0x258   : > { %1144 = shalt.err (!%p1141_p6)
}
 0x259   : > { %s1212_s16 = smov 128   ;;  %s1213_s15 = smov 8  }
 0x25a   : > { %997 = dma.vmem_to_hbm [thread:$0]  (%p1635_p2), %s1560_s26, 512, %s1558_s12, %s771_s21, %s1212_s16, %s1212_s16, %s1213_s15  }
 0x25b PF: > { %s800_s10 = sand.u32 1, %s1183_s18   ;;  %p1636_p0 = scmp.ne.s32.totalorder %s1625_s6, 0 }
 0x25c   : > { %p1637_p1 = scmp.ge.s32.totalorder %s1203_s23, 2  ;;  %s801_s11 = scalar_lea.sflag [#allocation4], %s800_s10 }
 0x25e   : > { %p1008_p9 = pnand %p1637_p1, %p1636_p0 }
 0x260   : > { %1178 = dma.done.wait (!%p1008_p9), %s801_s11, 512  }
 0x261   : > { %1180 = vsyncadd (!%p1008_p9), %s801_s11, 4294966784  ;;  %s22_s23 = sadd.s32 1, %s1203_s23   ;;  %s1638_s18 = smov %s1187_s19 }
 0x262   : > { %p19_p8 = scmp.ge.s32.totalorder %s22_s23, 4   ;;  %s1639_s19 = smov %s1191_s20 }
 0x263   : > { %s1640_s20 = smov %s1354_s14  ;;  %s1641_s21 = smov %s1199_s22 }
 0x264   : > { %s1642_s22 = smov %s1644_s13  ;;  %21 = sbr.rel (!%p19_p8) target bundleno = 10 (0xa), region = 93 }
 0x26b   :  { %806 = vsyncpa [#allocation3], 1 }
 0x26c   :  { %808 = vsyncpa [#allocation3 + $0x1], 1 }
 0x26d   :  { %809 = vsyncpa [#allocation4], 1 }
 0x26e   :  { %811 = vsyncpa [#allocation4 + $0x1], 1 }
 0x26f   :  { %812 = vsyncpa [#allocation5], 1 }
 0x270   :  { %814 = vsyncpa [#allocation5 + $0x1], 1 }

</bundles_post_ra>
